<compile_context>
chip_gen: v7x
topology: tpu7x:2x2x1
jax: 0.10.0
libtpu: 0.0.40
codegen_flags: <defaults>
</compile_context>

<pallas_src>
import math

import jax
import jax.numpy as jnp
import numpy as np
from jax.experimental import pallas as pl
from jax.experimental.pallas import tpu as pltpu


# ----------------------------------------------------------------------------
# normalize2mom: scale activation so that E[act(z)^2] == 1 for z ~ N(0, 1)
# (mirrors e3nn.math.normalize2mom, computed once at setup time).
# ----------------------------------------------------------------------------
def _normalize2mom_const(act, seed=0, n=1_000_000):
    z = jax.random.normal(jax.random.PRNGKey(seed), (n,), dtype=jnp.float32)
    c = 1.0 / jnp.sqrt(jnp.mean(jnp.square(act(z))))
    return float(jax.device_get(c))


# ----------------------------------------------------------------------------
# Segment bookkeeping.  irreps: list of (mul, ir_dim); acts: list of fn | None.
# Groups channels by activation function: [(ranges, act_fn, const)].
# ----------------------------------------------------------------------------
def _build_act_groups(irreps, acts, consts):
    assert len(irreps) == len(acts) == len(consts), (irreps, acts)
    start = 0
    grouped = {}
    order = []
    for (mul, ir_dim), act, cst in zip(irreps, acts, consts):
        width = mul * ir_dim
        if act is not None:
            # The PyTorch module's __init__ rejects activations on non-scalars,
            # so width == mul here and narrow(mul) == narrow(mul * ir.dim).
            assert ir_dim == 1, "Activation only applies to scalar (l=0) irreps"
            key = id(act)
            if key not in grouped:
                grouped[key] = ([], act, cst)
                order.append(key)
            grouped[key][0].append((start, start + width))
        start += width
    groups = [grouped[k] for k in order]
    return start, groups


# ----------------------------------------------------------------------------
# Kernel: single lane-dense load, one compare + select per activation group
# against a precomputed per-lane group-id plane, single lane-dense store.
# ----------------------------------------------------------------------------
def _make_kernel(acts_and_consts):
    def kernel(gid_ref, x_ref, o_ref):
        x = x_ref[...]                       # (TR, 128) full, lane-dense load
        gid = gid_ref[...]                   # (TR, 128) int32, resident
        xf = x.astype(jnp.float32)           # act computed in f32, cast back
        out = x                              # default: pass-through
        # TODO(synk): on v5e (single EUP) with several distinct activations,
        # each act() runs full-width; restrict to 128-aligned slabs if the EUP
        # slot ever becomes binding there.
        for g, (act, cst) in enumerate(acts_and_consts, start=1):
            y = (act(xf) * cst).astype(x.dtype)
            out = jnp.where(gid == g, y, out)
        o_ref[...] = out                     # single lane-dense store
    return kernel


# ----------------------------------------------------------------------------
# Wrapper.
# ----------------------------------------------------------------------------
def activation_forward(features, irreps, acts, consts, *,
                       target_block_bytes=None, min_blocks=2):
    """features: [..., C] -> [..., C], applying per-irrep normalized activations.

    TODO(synk): only dim == -1 (the PyTorch default) is supported.
    """
    C, act_groups = _build_act_groups(irreps, acts, consts)
    assert features.shape[-1] == C, (features.shape, C)

    if len(irreps) == 0:            # PyTorch: torch.zeros_like(features)
        return jnp.zeros_like(features)
    if not act_groups:              # all segments pass through -> identity
        return features

    dtype = features.dtype
    itemsize = int(jnp.dtype(dtype).itemsize)
    sub_mult = {4: 8, 2: 16, 1: 32}.get(itemsize, 8)   # dtype-aware sublanes

    orig_shape = features.shape
    E = int(np.prod(orig_shape))

    # --- lane-dense flattening: channel of flat element p is (p mod C) -------
    R = -(-E // 128)                          # rows of 128 lanes
    flat = features.reshape(-1)
    pad = R * 128 - E
    if pad:
        flat = jnp.pad(flat, (0, pad))
    x2 = flat.reshape(R, 128)

    # --- VMEM capacity -> tile budget ----------------------------------------
    try:
        info = pltpu.get_tpu_info()
        vmem_cap = int(getattr(info, "vmem_capacity_bytes", 64 << 20))
    except Exception:
        vmem_cap = 64 << 20                   # conservative (v7x per-core)
    if target_block_bytes is None:
        target_block_bytes = int(min(4 << 20, max(256 << 10, (vmem_cap * 6 // 10) // 12)))

    # --- periodic channel pattern: block rows multiple of lcm(C,128)/128 -----
    rows_per_period = C // math.gcd(C, 128)   # lcm(C, 128) / 128
    tr_unit = rows_per_period * sub_mult // math.gcd(rows_per_period, sub_mult)
    row_bytes = 128 * itemsize

    if R <= tr_unit:
        # Single block starting at element 0: no period alignment needed and
        # block dims equal to the full array dims satisfy the (8,128) rule.
        TR = R
        grid = (1,)
    else:
        total_units = -(-R // tr_unit)
        budget_k = max(1, target_block_bytes // (tr_unit * row_bytes))
        # Ensure >= min_blocks grid steps when the data allows it (v7x megacore).
        split_k = max(1, R // (min_blocks * tr_unit))
        k = max(1, min(budget_k, split_k, total_units))
        TR = k * tr_unit
        grid = (-(-R // TR),)                 # ragged last block: OOB writes masked

    # --- trace-time per-lane group-id plane (0 = pass-through) ---------------
    period_elems = rows_per_period * 128
    pos = np.arange(period_elems, dtype=np.int64) % C
    gid_period = np.zeros(period_elems, dtype=np.int32)
    for g, (ranges, _act, _cst) in enumerate(act_groups, start=1):
        for s, e in ranges:
            gid_period[(pos >= s) & (pos < e)] = g
    reps = -(-(TR * 128) // period_elems)
    gid_block = np.tile(gid_period, reps)[: TR * 128].reshape(TR, 128)
    gid_arr = jnp.asarray(gid_block)

    # --- VMEM budget / compiler params ----------------------------------------
    block_bytes = TR * row_bytes
    gid_bytes = TR * 128 * 4
    f32_bytes = TR * 128 * 4
    # 2x double-buffered in + 2x out + resident gid (double-buffered) + ~4
    # full-tile f32 temporaries + headroom.
    vmem_need = 4 * block_bytes + 2 * gid_bytes + 4 * f32_bytes + (4 << 20)
    vmem_limit = int(min(max(vmem_need, 32 << 20), int(0.9 * vmem_cap)))
    # TODO(synk): pathological C with a huge lcm(C,128) (e.g. large odd C) can
    # exceed this budget; a fallback using an in-kernel iota/mod mask with a
    # per-block channel offset would remove the period-alignment requirement.

    num_groups = len(act_groups)
    kernel = _make_kernel([(act, cst) for _r, act, cst in act_groups])

    cost = pl.CostEstimate(
        flops=int(R * 128 * (2 + 3 * num_groups)),
        transcendentals=int(R * 128 * num_groups),
        bytes_accessed=int(2 * R * 128 * itemsize + TR * 128 * 4),
    )

    out2 = pl.pallas_call(
        kernel,
        out_shape=jax.ShapeDtypeStruct((R, 128), dtype),
        grid=grid,
        in_specs=[
            pl.BlockSpec((TR, 128), lambda i: (0, 0)),   # gid plane: resident
            pl.BlockSpec((TR, 128), lambda i: (i, 0)),   # data rows
        ],
        out_specs=pl.BlockSpec((TR, 128), lambda i: (i, 0)),
        input_output_aliases={1: 0},                     # pure elementwise map
        compiler_params=pltpu.CompilerParams(
            dimension_semantics=("parallel",),           # shard rows across TCs
            vmem_limit_bytes=vmem_limit,
        ),
        cost_estimate=cost,
    )(gid_arr, x2)

    out_flat = out2.reshape(-1)
    if pad:
        out_flat = out_flat[:E]
    return out_flat.reshape(orig_shape)


# ----------------------------------------------------------------------------
# Pure-JAX reference mirroring the PyTorch forward (narrow / act / concat).
# ----------------------------------------------------------------------------
def _reference(features, irreps, acts, consts):
    outs = []
    idx = 0
    for (mul, ir_dim), act, cst in zip(irreps, acts, consts):
        width = mul * ir_dim
        seg = features[..., idx:idx + width]
        outs.append(act(seg) * cst if act is not None else seg)
        idx += width
    if not outs:
        return jnp.zeros_like(features)
    return outs[0] if len(outs) == 1 else jnp.concatenate(outs, axis=-1)


if __name__ == "__main__":
    # Irreps "4x0e + 3x0e + 2x1e": activations on the two scalar blocks only.
    irreps = [(4, 1), (3, 1), (2, 3)]          # (mul, ir.dim); C = 4 + 3 + 6 = 13
    acts = [jax.nn.silu, jnp.tanh, None]
    consts = [None if a is None else _normalize2mom_const(a) for a in acts]
    C = sum(m * d for m, d in irreps)

    key = jax.random.PRNGKey(0)
    k1, k2, k3 = jax.random.split(key, 3)

    # Test 1: tiny input -> single block, element-level padding path.
    x1 = jax.random.normal(k1, (20, C), dtype=jnp.float32)
    o1 = jax.block_until_ready(activation_forward(x1, irreps, acts, consts))
    assert o1.shape == x1.shape
    np.testing.assert_allclose(
        np.asarray(o1), np.asarray(_reference(x1, irreps, acts, consts)),
        rtol=1e-6, atol=1e-6)

    # Test 2: leading dims + multi-block grid + ragged last block (C=13 !% 128).
    # Small target_block_bytes forces several lcm-aligned blocks at this size.
    x2 = jax.random.normal(k2, (4, 750, C), dtype=jnp.float32)
    o2 = jax.block_until_ready(
        activation_forward(x2, irreps, acts, consts,
                           target_block_bytes=104 * 128 * 4))
    np.testing.assert_allclose(
        np.asarray(o2), np.asarray(_reference(x2, irreps, acts, consts)),
        rtol=1e-6, atol=1e-6)

    # Test 3: C a multiple of 128 (lane-aligned case), >= 2 parallel blocks.
    irreps3 = [(128, 1), (128, 1)]
    acts3 = [jax.nn.silu, None]
    consts3 = [_normalize2mom_const(jax.nn.silu), None]
    x3 = jax.random.normal(k3, (64, 256), dtype=jnp.float32)
    o3 = jax.block_until_ready(activation_forward(x3, irreps3, acts3, consts3))
    np.testing.assert_allclose(
        np.asarray(o3), np.asarray(_reference(x3, irreps3, acts3, consts3)),
        rtol=1e-6, atol=1e-6)

    print("KERNEL_OK")
</pallas_src>

<mosaic_0001>
module attributes {stable_mosaic.version = 11 : i64} {
  func.func @kernel(%arg0: i32, %arg1: memref<3x128xi32, #tpu.memory_space<vmem>>, %arg2: memref<3x128xf32, #tpu.memory_space<vmem>>, %arg3: memref<3x128xf32, #tpu.memory_space<vmem>>) attributes {dimension_semantics = [#tpu.dimension_semantics<parallel>], iteration_bounds = array<i64: 1>, scalar_prefetch = 0 : i64, scratch_operands = 0 : i64, tpu.core_type = #tpu.core_type<tc>, window_params = [{pipeline_mode = #tpu.pipeline_mode<synchronous>, transform_indices = @transform_0, window_bounds = array<i64: 3, 128>}, {transform_indices = @transform_1, window_bounds = array<i64: 3, 128>}, {transform_indices = @transform_2, window_bounds = array<i64: 3, 128>}]} {
    %c0 = arith.constant 0 : index
    %c0_0 = arith.constant 0 : index
    %0 = vector.load %arg2[%c0, %c0_0] : memref<3x128xf32, #tpu.memory_space<vmem>>, vector<3x128xf32>
    %c0_1 = arith.constant 0 : index
    %c0_2 = arith.constant 0 : index
    %1 = vector.load %arg1[%c0_1, %c0_2] : memref<3x128xi32, #tpu.memory_space<vmem>>, vector<3x128xi32>
    %2 = arith.negf %0 : vector<3x128xf32>
    %3 = math.exp %2 : vector<3x128xf32>
    %cst = arith.constant 1.000000e+00 : f32
    %4 = vector.broadcast %cst : f32 to vector<3x128xf32>
    %5 = arith.addf %4, %3 : vector<3x128xf32>
    %6 = arith.divf %4, %5 : vector<3x128xf32>
    %7 = arith.mulf %0, %6 : vector<3x128xf32>
    %cst_3 = arith.constant 1.67994988 : f32
    %8 = vector.broadcast %cst_3 : f32 to vector<3x128xf32>
    %9 = arith.mulf %7, %8 : vector<3x128xf32>
    %c1_i32 = arith.constant 1 : i32
    %10 = vector.broadcast %c1_i32 : i32 to vector<3x128xi32>
    %11 = arith.cmpi eq, %1, %10 : vector<3x128xi32>
    %12 = arith.select %11, %9, %0 : vector<3x128xi1>, vector<3x128xf32>
    %13 = math.tanh %0 : vector<3x128xf32>
    %cst_4 = arith.constant 1.59306204 : f32
    %14 = vector.broadcast %cst_4 : f32 to vector<3x128xf32>
    %15 = arith.mulf %13, %14 : vector<3x128xf32>
    %c2_i32 = arith.constant 2 : i32
    %16 = vector.broadcast %c2_i32 : i32 to vector<3x128xi32>
    %17 = arith.cmpi eq, %1, %16 : vector<3x128xi32>
    %18 = arith.select %17, %15, %12 : vector<3x128xi1>, vector<3x128xf32>
    %c0_5 = arith.constant 0 : index
    %c0_6 = arith.constant 0 : index
    %19 = vector.load %arg3[%c0_5, %c0_6] : memref<3x128xf32, #tpu.memory_space<vmem>>, vector<3x128xf32>
    tpu.vector_store %arg3[%c0_5, %c0_6], %18 {strides = array<i32>} : memref<3x128xf32, #tpu.memory_space<vmem>>, vector<3x128xf32>,
    return
  }
  func.func @transform_0(%arg0: i32) -> (i32, i32) {
    %c0_i32 = arith.constant 0 : i32
    %c0_i32_0 = arith.constant 0 : i32
    %c0_i32_1 = arith.constant 0 : i32
    return %c0_i32, %c0_i32_0 : i32, i32
  }
  func.func @transform_1(%arg0: i32) -> (i32, i32) {
    %c0_i32 = arith.constant 0 : i32
    %c0_i32_0 = arith.constant 0 : i32
    return %arg0, %c0_i32 : i32, i32
  }
  func.func @transform_2(%arg0: i32) -> (i32, i32) {
    %c0_i32 = arith.constant 0 : i32
    %c0_i32_0 = arith.constant 0 : i32
    return %arg0, %c0_i32 : i32, i32
  }
}

</mosaic_0001>

<bundles_post_ra>
// kernel: tpu_custom_call.1
= control target key start
LH: loop header
LB: loop body
LE: loop exit
PB: predicated region body
PF: predicated region fallthrough
CT: control target
= control target key end

     0   :  { %7 = vsyncpa [#allocation3], 0  ;;  %s157_s0 = inlined_call_operand.vmem [shape: s32[3,128], index: 0, kind: input, shape index: {}]   ;;  %s158_s1 = inlined_call_operand.hbm [shape: f32[3,128], index: 1, kind: input, shape index: {}, may-alias: {1,2}]   ;;  %s159_s2 = inlined_call_operand.hbm [shape: f32[3,128], index: 2, kind: output, shape index: {}, may-alias: {1,2}]  }
   0x1   :  { %8 = vsyncpa [#allocation4], 0  ;;  %s113_s9 = smov [#allocation2]   ;;  %s65_s13 = scalar_lea.hbm %s158_s1, 64 }
   0x2   :  { %s17_s10 = sshll.u32 %s113_s9, 4  ;;  %p66_p0 = scmp.ne.s32.totalorder %s158_s1, %s65_s13  ;;  %s18_s10 = int_to_ptr.vmem [resolvable:$true] %s17_s10 }
   0x3   :  { %p69_p1 = scmp.lt.u32.totalorder %s65_s13, %s158_s1 }
   0x5   :  { %p71_p2 = pnand %p69_p1, %p66_p0 }
   0x7   :  { %74 = shalt.err (!%p71_p2)
}
   0x8   :  { %s75_s18 = scalar_lea.vmem %s18_s10, 64  ;;  %p80_p4 = scmp.lt.s32.totalorder %s18_s10, %s18_s10 }
   0x9   :  { %p76_p3 = scmp.ne.s32.totalorder %s18_s10, %s75_s18  ;;  %p81_p5 = scmp.lt.s32.totalorder %s75_s18, %s75_s18 }
   0xb   :  { %p82_p6 = por %p81_p5, %p80_p4 }
   0xd   :  { %p83_p7 = pnand %p82_p6, %p76_p3 }
   0xf   :  { %86 = shalt.err (!%p83_p7)
}
  0x10   :  { %20 = dma.hbm_to_vmem [thread:$0]  %s158_s1, 64, %s18_s10, [#allocation3]  }
  0x11   :  { %109 = dma.done.wait [#allocation3], 64  }
  0x12   :  { %110 = vsyncadd [#allocation3], 4294967232  ;;  %v24_v0 = vld [vmem:[#allocation2] sm:$0x7]  ;;  %s114_s23 = smov [#allocation5]  }
  0x13   :  { %v56_v1 = vmul.f32 -1.442695, %v24_v0  ;;  %v25_v5 = vld [vmem:[%s157_s0] sm:$0x7]  ;;  %s47_s1 = sshll.u32 %s114_s23, 4  ;;  %s48_s1 = int_to_ptr.vmem [resolvable:$true] %s47_s1 }
  0x14   :  { %vm34_vm0 = vcmp.eq.s32.totalorder %v25_v5, 1  ;;  %vm38_vm1 = vcmp.eq.s32.totalorder %v25_v5, 2  ;;  %s87_s24 = scalar_lea.vmem %s48_s1, 64  ;;  %p92_p9 = scmp.lt.s32.totalorder %s48_s1, %s48_s1 }
  0x15   :  { %59 = vpow2.f32 %v56_v1  ;;  %p88_p8 = scmp.ne.s32.totalorder %s48_s1, %s87_s24  ;;  %p93_p10 = scmp.lt.s32.totalorder %s87_s24, %s87_s24 }
  0x16   :  { %61 = vtanh.f32 %v24_v0 }
  0x17   :  { %p94_p11 = por %p93_p10, %p92_p9 }
  0x19   :  { %p95_p12 = pnand %p94_p11, %p88_p8 }
  0x1f   :  { %v60_v2 = vpop.eup %59 }
  0x20   :  { %v29_v3 = vadd.f32 1.0, %v60_v2  ;;  %v62_v4 = vpop.eup %61 }
  0x21   :  { %v37_v8 = vmul.f32 1.593062, %v62_v4 }
  0x22   :  { %63 = vrcp.f32 %v29_v3 }
  0x2c   :  { %v64_v6 = vpop.eup %63 }
  0x2d   :  { %v32_v7 = vmul.f32 %v64_v6, %v24_v0 }
  0x2f   :  { %v33_v9 = vmul.f32 1.6799499, %v32_v7 }
  0x31   :  { %v35_v10 = vsel %vm34_vm0, %v33_v9, %v24_v0 }
  0x32   :  { %v39_v11 = vsel %vm38_vm1, %v37_v8, %v35_v10 }
  0x33   :  { %40 = vst [vmem:[#allocation5] sm:$0x7] %v39_v11 }
  0x34   :  { %98 = shalt.err (!%p95_p12)
}
  0x35   :  { %s99_s26 = scalar_lea.hbm %s159_s2, 64 }
  0x36   :  { %p100_p13 = scmp.ne.s32.totalorder %s159_s2, %s99_s26  ;;  %p103_p0 = scmp.lt.u32.totalorder %s99_s26, %s159_s2 }
  0x38   :  { %p105_p1 = pnand %p103_p0, %p100_p13 }
  0x3a   :  { %108 = shalt.err (!%p105_p1)
}
  0x3b   :  { %50 = dma.vmem_to_hbm [thread:$0]  %s48_s1, 64, %s159_s2, [#allocation4]  }
  0x3c   :  { %111 = dma.done.wait [#allocation4], 64  }
  0x3d   :  { %112 = vsyncadd [#allocation4], 4294967232 }
  0x3e   :  { %54 = vsyncpa [#allocation3], 1 }
  0x3f   :  { %55 = vsyncpa [#allocation4], 1 }

</bundles_post_ra>
